<compile_context>
chip_gen: v7x
topology: tpu7x:2x2x1
jax: 0.10.0
libtpu: 0.0.40
codegen_flags: <defaults>
</compile_context>

<pallas_src>
import functools

import jax
import jax.numpy as jnp
from jax.experimental import pallas as pl
from jax.experimental.pallas import tpu as pltpu


# ---------------------------------------------------------------------------
# Pallas conv3d kernel: grid = (batch, output-frame, temporal-tap)
# ---------------------------------------------------------------------------
def _conv3d_kernel(x_ref, w_ref, b_ref, o_ref, fbuf_ref, acc_ref, *,
                   n_frames, H, W, KT, KH, KW, PT, PH, PW,
                   apply_relu, upsample, pack):
    # x_ref : (H, W, Cin)                 one (unpadded) input frame, bf16
    # w_ref : (KT, KH*KW*Cin, Cout)       resident weights, bf16
    # b_ref : (1, Cout)                   f32 bias
    # o_ref : (Hout, Wout*Cout) if pack else (Hout, Wout, Cout)
    # fbuf_ref : (H+2*PH, W+2*PW, Cin)    VMEM scratch, spatially zero-padded frame
    # acc_ref  : (H*W, Cout) f32          VMEM accumulator across the KT axis
    f = pl.program_id(1)
    t = pl.program_id(2)
    cin = x_ref.shape[-1]
    cout = w_ref.shape[-1]

    g = f + t - PT                                   # source frame for this tap
    valid = jnp.logical_and(g >= 0, g < n_frames)    # temporal "same" padding

    # ---- init accumulator & zero-padded frame buffer once per output frame ----
    @pl.when(t == 0)
    def _():
        acc_ref[...] = jnp.zeros_like(acc_ref)
        fbuf_ref[...] = jnp.zeros_like(fbuf_ref)     # halo stays zero for t > 0

    # ---- one temporal tap: im2col over the 3x3 window, single MXU matmul ----
    @pl.when(valid)
    def _():
        fbuf_ref[pl.ds(PH, H), pl.ds(PW, W), :] = x_ref[...]
        cols = []
        for dh in range(KH):
            for dw in range(KW):
                cols.append(
                    fbuf_ref[pl.ds(dh, H), pl.ds(dw, W), :].reshape(H * W, cin))
        patch = jnp.concatenate(cols, axis=-1)       # (H*W, KH*KW*Cin)
        acc_ref[...] += jnp.dot(patch, w_ref[t],
                                preferred_element_type=jnp.float32)

    # ---- epilogue: bias (+ReLU) (+2x nearest upsample), lane-dense store ----
    @pl.when(t == KT - 1)
    def _():
        r = acc_ref[...] + b_ref[...]                # (H*W, Cout) f32
        if apply_relu:
            r = jnp.maximum(r, 0.0)
        r = r.reshape(H, W, cout)
        if upsample:
            # nearest 2x on H and W (ReLU commutes with nearest upsampling)
            r = jnp.concatenate([r.reshape(H, W, 1, cout)] * 2,
                                axis=2).reshape(H, 2 * W, cout)
            r = jnp.concatenate([r.reshape(H, 1, 2 * W, cout)] * 2,
                                axis=1).reshape(2 * H, 2 * W, cout)
        ho, wo = r.shape[0], r.shape[1]
        if pack:                                     # pack (W, C) on the lane axis
            o_ref[...] = r.reshape(ho, wo * cout).astype(o_ref.dtype)
        else:
            o_ref[...] = r.astype(o_ref.dtype)


def conv3d_pallas(x, w, b, *, apply_relu, upsample,
                  out_dtype=jnp.bfloat16, compute_dtype=jnp.bfloat16):
    """x: (B, F, H, W, Cin) channel-last.  w: (Cout, Cin, KT, KH, KW) torch layout."""
    B, F, H, W, Cin = x.shape
    Cout, _, KT, KH, KW = w.shape
    PT, PH, PW = KT // 2, KH // 2, KW // 2
    Hout = 2 * H if upsample else H
    Wout = 2 * W if upsample else W
    pack = Cout < 128          # lane-pack narrow-channel outputs

    xc = x.astype(compute_dtype)
    # (Cout, Cin, KT, KH, KW) -> (KT, KH*KW*Cin, Cout), matching im2col columns
    wk = jnp.transpose(w, (2, 3, 4, 1, 0)).reshape(KT, KH * KW * Cin, Cout)
    wk = wk.astype(compute_dtype)
    b2 = b.reshape(1, Cout).astype(jnp.float32)

    kernel = functools.partial(
        _conv3d_kernel, n_frames=F, H=H, W=W, KT=KT, KH=KH, KW=KW,
        PT=PT, PH=PH, PW=PW, apply_relu=apply_relu, upsample=upsample, pack=pack)

    if pack:
        out_shape = jax.ShapeDtypeStruct((B, F, Hout, Wout * Cout), out_dtype)
        out_spec = pl.BlockSpec((None, None, Hout, Wout * Cout),
                                lambda bi, fi, ti: (bi, fi, 0, 0))
    else:
        out_shape = jax.ShapeDtypeStruct((B, F, Hout, Wout, Cout), out_dtype)
        out_spec = pl.BlockSpec((None, None, Hout, Wout, Cout),
                                lambda bi, fi, ti: (bi, fi, 0, 0, 0))

    def x_index(bi, fi, ti):
        # temporal "same" padding: clamp the frame index; the contribution of
        # out-of-range taps is skipped inside the kernel (pl.when(valid)).
        return (bi, jnp.clip(fi + ti - PT, 0, F - 1), 0, 0, 0)

    y = pl.pallas_call(
        kernel,
        out_shape=out_shape,
        grid_spec=pltpu.PrefetchScalarGridSpec(
            num_scalar_prefetch=0,
            grid=(B, F, KT),
            in_specs=[
                pl.BlockSpec((None, None, H, W, Cin), x_index),       # one frame
                pl.BlockSpec((KT, KH * KW * Cin, Cout),
                             lambda bi, fi, ti: (0, 0, 0)),            # resident weights
                pl.BlockSpec((1, Cout), lambda bi, fi, ti: (0, 0)),    # bias
            ],
            out_specs=out_spec,
            scratch_shapes=[
                pltpu.VMEM((H + 2 * PH, W + 2 * PW, Cin), compute_dtype),  # padded frame
                pltpu.VMEM((H * W, Cout), jnp.float32),                    # f32 accumulator
            ],
        ),
        compiler_params=pltpu.CompilerParams(
            dimension_semantics=("parallel", "parallel", "arbitrary"),
            vmem_limit_bytes=48 * 1024 * 1024),
    )(xc, wk, b2)

    if pack:
        y = y.reshape(B, F, Hout, Wout, Cout)   # free row-major split for the next layer
    return y


# ---------------------------------------------------------------------------
# SpatialDecoder forward (Pallas version)
# ---------------------------------------------------------------------------
def spatial_decoder_forward(x, p, *, compute_dtype=jnp.bfloat16):
    """x: (B, F, latent_channels, H, W)  ->  (B, F, in_channels, 4H, 4W)"""
    h = jnp.transpose(x, (0, 1, 3, 4, 2))                 # -> (B, F, H, W, C)
    h = conv3d_pallas(h, p["w1"], p["b1"], apply_relu=True, upsample=True,
                      out_dtype=compute_dtype, compute_dtype=compute_dtype)
    h = conv3d_pallas(h, p["w2"], p["b2"], apply_relu=True, upsample=True,
                      out_dtype=compute_dtype, compute_dtype=compute_dtype)
    h = conv3d_pallas(h, p["w3"], p["b3"], apply_relu=True, upsample=False,
                      out_dtype=compute_dtype, compute_dtype=compute_dtype)
    h = conv3d_pallas(h, p["w4"], p["b4"], apply_relu=False, upsample=False,
                      out_dtype=jnp.float32, compute_dtype=compute_dtype)
    return jnp.transpose(h, (0, 1, 4, 2, 3))              # -> (B, F, Cout, 4H, 4W)


# ---------------------------------------------------------------------------
# Pure-JAX f32 reference (lax.conv_general_dilated) for the correctness check
# ---------------------------------------------------------------------------
def _conv3d_ref(x_ncdhw, w, b):
    out = jax.lax.conv_general_dilated(
        x_ncdhw, w, window_strides=(1, 1, 1),
        padding=((2, 2), (1, 1), (1, 1)),
        dimension_numbers=("NCDHW", "OIDHW", "NCDHW"),
        precision=jax.lax.Precision.HIGHEST)
    return out + b[None, :, None, None, None]


def spatial_decoder_ref(x, p):
    h = jnp.swapaxes(x, 1, 2)                              # (B, C, F, H, W)
    h = _conv3d_ref(h, p["w1"], p["b1"])
    h = jax.nn.relu(jnp.repeat(jnp.repeat(h, 2, axis=3), 2, axis=4))
    h = _conv3d_ref(h, p["w2"], p["b2"])
    h = jax.nn.relu(jnp.repeat(jnp.repeat(h, 2, axis=3), 2, axis=4))
    h = jax.nn.relu(_conv3d_ref(h, p["w3"], p["b3"]))
    h = _conv3d_ref(h, p["w4"], p["b4"])
    return jnp.swapaxes(h, 1, 2)                           # (B, F, Cout, H, W)


# ---------------------------------------------------------------------------
def init_params(key, in_channels, latent_channels):
    hid = in_channels * 64
    shapes = {
        "w1": (latent_channels, latent_channels, 5, 3, 3), "b1": (latent_channels,),
        "w2": (hid, latent_channels, 5, 3, 3),             "b2": (hid,),
        "w3": (hid, hid, 5, 3, 3),                         "b3": (hid,),
        "w4": (in_channels, hid, 5, 3, 3),                 "b4": (in_channels,),
    }
    params = {}
    keys = jax.random.split(key, len(shapes))
    for k, (name, shp) in zip(keys, sorted(shapes.items())):
        scale = 0.05 if name.startswith("w") else 0.01
        params[name] = scale * jax.random.normal(k, shp, dtype=jnp.float32)
    return params


if __name__ == "__main__":
    in_channels, latent_channels = 2, 4
    B, F, H, W = 2, 4, 4, 4

    key = jax.random.PRNGKey(0)
    kx, kp = jax.random.split(key)
    x = jax.random.normal(kx, (B, F, latent_channels, H, W), dtype=jnp.float32)
    params = init_params(kp, in_channels, latent_channels)

    out = jax.block_until_ready(spatial_decoder_forward(x, params))
    assert out.shape == (B, F, in_channels, 4 * H, 4 * W), out.shape

    ref = jax.block_until_ready(spatial_decoder_ref(x, params))
    err = float(jnp.max(jnp.abs(out.astype(jnp.float32) - ref)))
    scale = float(jnp.max(jnp.abs(ref))) + 1e-6
    # tolerance sized for bf16 MXU operands (f32 accumulation) vs the f32 ref
    assert err / scale < 5e-2, (err, scale)

    print("KERNEL_OK")
</pallas_src>

<mosaic_0001>
module attributes {stable_mosaic.version = 11 : i64} {
  func.func @_conv3d_kernel(%arg0: i32, %arg1: i32, %arg2: i32, %arg3: memref<1x1x4x4x4xbf16, #tpu.memory_space<vmem>>, %arg4: memref<5x36x4xbf16, #tpu.memory_space<vmem>>, %arg5: memref<1x4xf32, #tpu.memory_space<vmem>>, %arg6: memref<1x1x8x32xbf16, #tpu.memory_space<vmem>>, %arg7: memref<6x6x4xbf16, #tpu.memory_space<vmem>>, %arg8: memref<16x4xf32, #tpu.memory_space<vmem>>) attributes {dimension_semantics = [#tpu.dimension_semantics<parallel>, #tpu.dimension_semantics<parallel>, #tpu.dimension_semantics<arbitrary>], iteration_bounds = array<i64: 2, 4, 5>, scalar_prefetch = 0 : i64, scratch_operands = 2 : i64, tpu.core_type = #tpu.core_type<tc>, window_params = [{transform_indices = @transform_0, window_bounds = array<i64: 1, 1, 4, 4, 4>}, {pipeline_mode = #tpu.pipeline_mode<synchronous>, transform_indices = @transform_1, window_bounds = array<i64: 5, 36, 4>}, {pipeline_mode = #tpu.pipeline_mode<synchronous>, transform_indices = @transform_2, window_bounds = array<i64: 1, 4>}, {transform_indices = @transform_3, window_bounds = array<i64: 1, 1, 8, 32>}]} {
    %0 = arith.addi %arg1, %arg2 : i32
    %c2_i32 = arith.constant 2 : i32
    %1 = arith.subi %0, %c2_i32 : i32
    %c0_i32 = arith.constant 0 : i32
    %2 = arith.cmpi sge, %1, %c0_i32 : i32
    %c4_i32 = arith.constant 4 : i32
    %3 = arith.cmpi slt, %1, %c4_i32 : i32
    %4 = arith.andi %2, %3 : i1
    %c0_i32_0 = arith.constant 0 : i32
    %5 = arith.cmpi eq, %arg2, %c0_i32_0 : i32
    %6 = arith.extui %5 : i1 to i32
    %c0_i32_1 = arith.constant 0 : i32
    %7 = arith.cmpi ne, %6, %c0_i32_1 : i32
    scf.if %7 {
      %cst = arith.constant 0.000000e+00 : f32
      %13 = vector.broadcast %cst : f32 to vector<16x4xf32>
      %c0 = arith.constant 0 : index
      %c0_5 = arith.constant 0 : index
      %14 = vector.load %arg8[%c0, %c0_5] : memref<16x4xf32, #tpu.memory_space<vmem>>, vector<16x4xf32>
      tpu.vector_store %arg8[%c0, %c0_5], %13 {strides = array<i32>} : memref<16x4xf32, #tpu.memory_space<vmem>>, vector<16x4xf32>,
      %cst_6 = arith.constant 0.000000e+00 : bf16
      %15 = vector.broadcast %cst_6 : bf16 to vector<6x6x4xbf16>
      %c0_7 = arith.constant 0 : index
      %c0_8 = arith.constant 0 : index
      %c0_9 = arith.constant 0 : index
      %16 = vector.load %arg7[%c0_7, %c0_8, %c0_9] : memref<6x6x4xbf16, #tpu.memory_space<vmem>>, vector<6x6x4xbf16>
      tpu.vector_store %arg7[%c0_7, %c0_8, %c0_9], %15 {strides = array<i32>} : memref<6x6x4xbf16, #tpu.memory_space<vmem>>, vector<6x6x4xbf16>,
    } else {
    }
    %8 = arith.extui %4 : i1 to i32
    %c0_i32_2 = arith.constant 0 : i32
    %9 = arith.cmpi ne, %8, %c0_i32_2 : i32
    scf.if %9 {
      %c0 = arith.constant 0 : index
      %c0_5 = arith.constant 0 : index
      %c0_6 = arith.constant 0 : index
      %c0_7 = arith.constant 0 : index
      %c0_8 = arith.constant 0 : index
      %13 = vector.load %arg3[%c0, %c0_5, %c0_6, %c0_7, %c0_8] : memref<1x1x4x4x4xbf16, #tpu.memory_space<vmem>>, vector<1x1x4x4x4xbf16>
      %14 = vector.shape_cast %13 : vector<1x1x4x4x4xbf16> to vector<4x4x4xbf16>
      %c1 = arith.constant 1 : index
      %c1_9 = arith.constant 1 : index
      %c0_10 = arith.constant 0 : index
      %15 = vector.load %arg7[%c1, %c1_9, %c0_10] : memref<6x6x4xbf16, #tpu.memory_space<vmem>>, vector<4x4x4xbf16>
      tpu.vector_store %arg7[%c1, %c1_9, %c0_10], %14 {strides = array<i32>} : memref<6x6x4xbf16, #tpu.memory_space<vmem>>, vector<4x4x4xbf16>,
      %c0_11 = arith.constant 0 : index
      %c0_12 = arith.constant 0 : index
      %c0_13 = arith.constant 0 : index
      %16 = vector.load %arg7[%c0_11, %c0_12, %c0_13] : memref<6x6x4xbf16, #tpu.memory_space<vmem>>, vector<4x4x4xbf16>
      %17 = vector.shape_cast %16 : vector<4x4x4xbf16> to vector<16x4xbf16>
      %c0_14 = arith.constant 0 : index
      %c1_15 = arith.constant 1 : index
      %c0_16 = arith.constant 0 : index
      %18 = vector.load %arg7[%c0_14, %c1_15, %c0_16] : memref<6x6x4xbf16, #tpu.memory_space<vmem>>, vector<4x4x4xbf16>
      %19 = vector.shape_cast %18 : vector<4x4x4xbf16> to vector<16x4xbf16>
      %c0_17 = arith.constant 0 : index
      %c2 = arith.constant 2 : index
      %c0_18 = arith.constant 0 : index
      %20 = vector.load %arg7[%c0_17, %c2, %c0_18] : memref<6x6x4xbf16, #tpu.memory_space<vmem>>, vector<4x4x4xbf16>
      %21 = vector.shape_cast %20 : vector<4x4x4xbf16> to vector<16x4xbf16>
      %c1_19 = arith.constant 1 : index
      %c0_20 = arith.constant 0 : index
      %c0_21 = arith.constant 0 : index
      %22 = vector.load %arg7[%c1_19, %c0_20, %c0_21] : memref<6x6x4xbf16, #tpu.memory_space<vmem>>, vector<4x4x4xbf16>
      %23 = vector.shape_cast %22 : vector<4x4x4xbf16> to vector<16x4xbf16>
      %c1_22 = arith.constant 1 : index
      %c1_23 = arith.constant 1 : index
      %c0_24 = arith.constant 0 : index
      %24 = vector.load %arg7[%c1_22, %c1_23, %c0_24] : memref<6x6x4xbf16, #tpu.memory_space<vmem>>, vector<4x4x4xbf16>
      %25 = vector.shape_cast %24 : vector<4x4x4xbf16> to vector<16x4xbf16>
      %c1_25 = arith.constant 1 : index
      %c2_26 = arith.constant 2 : index
      %c0_27 = arith.constant 0 : index
      %26 = vector.load %arg7[%c1_25, %c2_26, %c0_27] : memref<6x6x4xbf16, #tpu.memory_space<vmem>>, vector<4x4x4xbf16>
      %27 = vector.shape_cast %26 : vector<4x4x4xbf16> to vector<16x4xbf16>
      %c2_28 = arith.constant 2 : index
      %c0_29 = arith.constant 0 : index
      %c0_30 = arith.constant 0 : index
      %28 = vector.load %arg7[%c2_28, %c0_29, %c0_30] : memref<6x6x4xbf16, #tpu.memory_space<vmem>>, vector<4x4x4xbf16>
      %29 = vector.shape_cast %28 : vector<4x4x4xbf16> to vector<16x4xbf16>
      %c2_31 = arith.constant 2 : index
      %c1_32 = arith.constant 1 : index
      %c0_33 = arith.constant 0 : index
      %30 = vector.load %arg7[%c2_31, %c1_32, %c0_33] : memref<6x6x4xbf16, #tpu.memory_space<vmem>>, vector<4x4x4xbf16>
      %31 = vector.shape_cast %30 : vector<4x4x4xbf16> to vector<16x4xbf16>
      %c2_34 = arith.constant 2 : index
      %c2_35 = arith.constant 2 : index
      %c0_36 = arith.constant 0 : index
      %32 = vector.load %arg7[%c2_34, %c2_35, %c0_36] : memref<6x6x4xbf16, #tpu.memory_space<vmem>>, vector<4x4x4xbf16>
      %33 = vector.shape_cast %32 : vector<4x4x4xbf16> to vector<16x4xbf16>
      %34 = tpu.concatenate %17, %19, %21, %23, %25, %27, %29, %31, %33 in 1 : vector<16x4xbf16>, vector<16x4xbf16>, vector<16x4xbf16>, vector<16x4xbf16>, vector<16x4xbf16>, vector<16x4xbf16>, vector<16x4xbf16>, vector<16x4xbf16>, vector<16x4xbf16> -> vector<16x36xbf16>
      %c0_37 = arith.constant 0 : index
      %c0_38 = arith.constant 0 : index
      %35 = vector.load %arg8[%c0_37, %c0_38] : memref<16x4xf32, #tpu.memory_space<vmem>>, vector<16x4xf32>
      %36 = arith.index_cast %arg2 : i32 to index
      %c0_39 = arith.constant 0 : index
      %c0_40 = arith.constant 0 : index
      %37 = vector.load %arg4[%36, %c0_39, %c0_40] : memref<5x36x4xbf16, #tpu.memory_space<vmem>>, vector<1x36x4xbf16>
      %38 = vector.shape_cast %37 : vector<1x36x4xbf16> to vector<36x4xbf16>
      %cst = arith.constant dense<0.000000e+00> : vector<16x4xf32>
      %39 = tpu.matmul %34, %38, %cst {dimension_numbers = #tpu.dot_dimension_numbers<[1], [0], [0], [1], [0, 0, 1, 1], [], []>} : vector<16x36xbf16>, vector<36x4xbf16>, vector<16x4xf32> -> vector<16x4xf32>
      %40 = arith.addf %35, %39 : vector<16x4xf32>
      %c0_41 = arith.constant 0 : index
      %c0_42 = arith.constant 0 : index
      %41 = vector.load %arg8[%c0_41, %c0_42] : memref<16x4xf32, #tpu.memory_space<vmem>>, vector<16x4xf32>
      tpu.vector_store %arg8[%c0_41, %c0_42], %40 {strides = array<i32>} : memref<16x4xf32, #tpu.memory_space<vmem>>, vector<16x4xf32>,
    } else {
    }
    %c4_i32_3 = arith.constant 4 : i32
    %10 = arith.cmpi eq, %arg2, %c4_i32_3 : i32
    %11 = arith.extui %10 : i1 to i32
    %c0_i32_4 = arith.constant 0 : i32
    %12 = arith.cmpi ne, %11, %c0_i32_4 : i32
    scf.if %12 {
      %c0 = arith.constant 0 : index
      %c0_5 = arith.constant 0 : index
      %13 = vector.load %arg8[%c0, %c0_5] : memref<16x4xf32, #tpu.memory_space<vmem>>, vector<16x4xf32>
      %c0_6 = arith.constant 0 : index
      %c0_7 = arith.constant 0 : index
      %14 = vector.load %arg5[%c0_6, %c0_7] : memref<1x4xf32, #tpu.memory_space<vmem>>, vector<1x4xf32>
      %15 = vector.broadcast %14 : vector<1x4xf32> to vector<16x4xf32>
      %16 = arith.addf %13, %15 : vector<16x4xf32>
      %cst = arith.constant 0.000000e+00 : f32
      %17 = vector.broadcast %cst : f32 to vector<16x4xf32>
      %18 = arith.maximumf %16, %17 : vector<16x4xf32>
      %19 = vector.shape_cast %18 : vector<16x4xf32> to vector<4x4x4xf32>
      %20 = vector.shape_cast %19 : vector<4x4x4xf32> to vector<4x4x1x4xf32>
      %21 = tpu.concatenate %20, %20 in 2 : vector<4x4x1x4xf32>, vector<4x4x1x4xf32> -> vector<4x4x2x4xf32>
      %22 = vector.shape_cast %21 : vector<4x4x2x4xf32> to vector<4x8x4xf32>
      %23 = vector.shape_cast %22 : vector<4x8x4xf32> to vector<4x1x8x4xf32>
      %24 = tpu.concatenate %23, %23 in 1 : vector<4x1x8x4xf32>, vector<4x1x8x4xf32> -> vector<4x2x8x4xf32>
      %25 = vector.shape_cast %24 : vector<4x2x8x4xf32> to vector<8x8x4xf32>
      %26 = vector.shape_cast %25 : vector<8x8x4xf32> to vector<8x32xf32>
      %27 = arith.truncf %26 : vector<8x32xf32> to vector<8x32xbf16>
      %c0_8 = arith.constant 0 : index
      %c0_9 = arith.constant 0 : index
      %c0_10 = arith.constant 0 : index
      %c0_11 = arith.constant 0 : index
      %28 = vector.load %arg6[%c0_8, %c0_9, %c0_10, %c0_11] : memref<1x1x8x32xbf16, #tpu.memory_space<vmem>>, vector<1x1x8x32xbf16>
      %29 = vector.shape_cast %28 : vector<1x1x8x32xbf16> to vector<8x32xbf16>
      %30 = vector.shape_cast %27 : vector<8x32xbf16> to vector<1x1x8x32xbf16>
      tpu.vector_store %arg6[%c0_8, %c0_9, %c0_10, %c0_11], %30 {strides = array<i32>} : memref<1x1x8x32xbf16, #tpu.memory_space<vmem>>, vector<1x1x8x32xbf16>,
    } else {
    }
    return
  }
  func.func @transform_0(%arg0: i32, %arg1: i32, %arg2: i32) -> (i32, i32, i32, i32, i32) {
    %0 = arith.addi %arg1, %arg2 : i32
    %c2_i32 = arith.constant 2 : i32
    %1 = arith.subi %0, %c2_i32 : i32
    %c0_i32 = arith.constant 0 : i32
    %c3_i32 = arith.constant 3 : i32
    %2 = arith.maxsi %c0_i32, %1 : i32
    %3 = arith.minsi %c3_i32, %2 : i32
    %c0_i32_0 = arith.constant 0 : i32
    %c0_i32_1 = arith.constant 0 : i32
    %c0_i32_2 = arith.constant 0 : i32
    %c0_i32_3 = arith.constant 0 : i32
    return %arg0, %3, %c0_i32_0, %c0_i32_1, %c0_i32_2 : i32, i32, i32, i32, i32
  }
  func.func @transform_1(%arg0: i32, %arg1: i32, %arg2: i32) -> (i32, i32, i32) {
    %c0_i32 = arith.constant 0 : i32
    %c0_i32_0 = arith.constant 0 : i32
    %c0_i32_1 = arith.constant 0 : i32
    %c0_i32_2 = arith.constant 0 : i32
    return %c0_i32, %c0_i32_0, %c0_i32_1 : i32, i32, i32
  }
  func.func @transform_2(%arg0: i32, %arg1: i32, %arg2: i32) -> (i32, i32) {
    %c0_i32 = arith.constant 0 : i32
    %c0_i32_0 = arith.constant 0 : i32
    %c0_i32_1 = arith.constant 0 : i32
    return %c0_i32, %c0_i32_0 : i32, i32
  }
  func.func @transform_3(%arg0: i32, %arg1: i32, %arg2: i32) -> (i32, i32, i32, i32) {
    %c0_i32 = arith.constant 0 : i32
    %c0_i32_0 = arith.constant 0 : i32
    %c0_i32_1 = arith.constant 0 : i32
    return %arg0, %arg1, %c0_i32, %c0_i32_0 : i32, i32, i32, i32
  }
}

</mosaic_0001>

<bundles_post_ra>
// kernel: tpu_custom_call.1
= control target key start
LH: loop header
LB: loop body
LE: loop exit
PB: predicated region body
PF: predicated region fallthrough
CT: control target
= control target key end

     0   :  { %8 = vsyncpa [#allocation5], 0  ;;  %s2582_s0 = inlined_call_operand.vmem [shape: bf16[2,4,4,4,4], index: 0, kind: input, shape index: {}]   ;;  %s2583_s1 = inlined_call_operand.vmem [shape: bf16[5,36,4], index: 1, kind: input, shape index: {}]   ;;  %s2584_s2 = inlined_call_operand.vmem [shape: f32[1,4], index: 2, kind: input, shape index: {}]   ;;  %s2585_s3 = inlined_call_operand.hbm [shape: bf16[2,4,8,32], index: 3, kind: output, shape index: {}]  }
   0x1   :  { %10 = vsyncpa [#allocation5 + $0x1], 0  ;;  %s2196_s12 = smov 0   ;;  %s2198_s13 = smov 0  }
   0x2   :  { %s2200_s14 = smov 0   ;;  %s2202_s15 = smov 0  }
   0x3   :  { %s2204_s16 = smov 0   ;;  %s2206_s17 = smov 0  }
   0x4   :  { %s2208_s18 = smov 0   ;;  %s2210_s19 = smov 0  }
   0x5   :  { %s2212_s20 = smov 0   ;;  %s2214_s21 = smov 0  }
   0x6 LB: > { %s1805_s22 = sadd.s32 4294967295, %s2150_s21   ;;  %s1806_s23 = sadd.s32 4294967294, %s2150_s21   ;;  %s2150_s21 = sphi %s2214_s21, %s16_s21   ;;  %s2146_s20 = sphi %s2212_s20, %s2611_s20   ;;  %s2142_s19 = sphi %s2210_s19, %s2610_s19   ;;  %s2138_s18 = sphi %s2208_s18, %s2609_s18   ;;  %s2134_s17 = sphi %s2206_s17, %s2608_s17   ;;  %s2130_s16 = sphi %s2204_s16, %s2607_s16   ;;  %s2126_s15 = sphi %s2202_s15, %s2606_s15   ;;  %s2122_s14 = sphi %s2200_s14, %s2605_s14   ;;  %s2118_s13 = sphi %s2198_s13, %s2604_s13   ;;  %s2114_s12 = sphi %s2196_s12, %s2603_s12  }
   0x7   : > { %s28_s24 = sadd.s32 1, %s2138_s18  ;;  %s31_s25 = sadd.s32 1, %s2142_s19 }
   0x8   : > { %p29_p0 = scmp.ge.s32.totalorder %s28_s24, 5  ;;  %s35_s26 = sadd.s32 1, %s2146_s20 }
   0x9   : > { %p136_p1 = scmp.ne.s32.totalorder %s2122_s14, %s2118_s13  ;;  %p137_p2 = scmp.eq.s32.totalorder %s1805_s22, 39 }
   0xa   : > { %s2613_s24 = smov (%p29_p0, %s28_s24), 0  ;;  %s2615_s25 = smov (!%p29_p0, %s31_s25), %s2142_s19 }
   0xb   : > { %p142_p3 = scmp.ne.s32.totalorder %s2118_s13, %s2114_s12  ;;  %p33_p4 = scmp.ge.s32.totalorder %s2615_s25, 4 }
   0xc   : > { %p143_p5 = scmp.eq.s32.totalorder %s1806_s23, 39  ;;  %p2258_p6 = por %p137_p2, %p136_p1 }
   0xd   : > { %s2617_s25 = smov (%p33_p4, %s2615_s25), 0  ;;  %s2619_s26 = smov (!%p33_p4, %s35_s26), %s2146_s20 }
   0xe   : > { %2590 = sst [smem:[#allocation7_spill]] %s2617_s25  ;;  %p2265_p7 = por %p143_p5, %p142_p3 }
   0xf   : > { %p1821_p8 = scmp.ge.s32.totalorder %s2150_s21, 1  ;;  %p37_p9 = scmp.ge.s32.totalorder %s2619_s26, 2 }
  0x10   : > { %p191_p10 = scmp.lt.s32.totalorder %s2150_s21, 41  ;;  %s122_s29 = ssub.s32 %s2142_s19, %s2617_s25 }
  0x11   : > { %s2621_s26 = smov (%p37_p9, %s2619_s26), 0  ;;  %s126_s5 = sadd.s32 1, %s2122_s14 }
  0x12   : > { %2592 = sst [smem:[#allocation8_spill]] %s2621_s26  ;;  %p192_p11 = pnand %p1821_p8, %p191_p10 }
  0x13   : > { %s121_s30 = ssub.s32 %s2146_s20, %s2621_s26  ;;  %s2586_s7 = sand.u32 (!%p192_p11), 1, %s2118_s13  }
  0x14   : > { %s123_s4 = sor.u32 %s122_s29, %s121_s30  ;;  %195 = sbr.rel (%p192_p11) target bundleno = 619 (0x26b), region = 32 }
  0x15   : > { %p124_p12 = scmp.eq.s32.totalorder %s123_s4, 0  ;;  %s225_s8 = sadd.s32 (!%p192_p11), %s2126_s15, %s2130_s16 }
  0x16   : > { %s2286_s9 = sshll.u32 (!%p192_p11), %s2586_s7, 2  ;;  %s1823_s10 = sadd.s32 (!%p192_p11), 4294967294, %s225_s8 }
  0x17   : > { %s2279_s6 = scalar_select %p124_p12, %s2122_s14, %s126_s5  }
  0x18   : > { %p227_p13 = scmp.gt.s32.totalorder (!%p192_p11), %s1823_s10, 0  ;;  %p1824_p0 = scmp.lt.s32.totalorder (!%p192_p11), %s1823_s10, 3 }
  0x19   : > { %p231_p1 = scmp.lt.s32.totalorder (!%p192_p11), %s2134_s17, 1  ;;  %p249_p2 = scmp.ge.s32.totalorder (!%p192_p11), %s1823_s10, 0 }
  0x1a   : > { %p250_p4 = scmp.lt.s32.totalorder (!%p192_p11), %s1823_s10, 4  ;;  %s224_s25 = scalar_lea.vmem (!%p192_p11), [#allocation4], %s2286_s9 }
  0x1b   : > { %s228_s11 = scalar_select %p227_p13, %s1823_s10, 0 }
  0x1c   : > { %s232_s22 = scalar_select %p231_p1, %s2134_s17, 1 }
  0x1d   : > { %s2623_s11 = smov (!%p1824_p0, %s228_s11), 3  ;;  %p2290_p5 = pnand %p250_p4, %p249_p2 }
  0x1e   : > { %p233_p3 = scmp.lt.s32.totalorder %s2623_s11, 3  ;;  %s1830_s23 = sshll.u32 %s232_s22, 4 }
  0x1f   : > { %p1833_p8 = scmp.ne.s32.totalorder %s2126_s15, 0 }
  0x20   : > { %s2625_s11 = smov (!%p233_p3, %s2623_s11), 3  ;;  %vm257_vm0 = vcmask (!%p1833_p8), 31744   ;;  %vm260_vm1 = vcmask (!%p1833_p8), 26624   ;;  %v2152_v0 = vmov (!%p1833_p8), 0.0   ;;  %v2153_v1 = vmov (!%p1833_p8), 0  }
  0x21   : > { %s1829_s30 = sshll.u32 %s2625_s11, 2  ;;  %256 = sbr.rel (%p1833_p8) target bundleno = 40 (0x28), region = 36  ;;  %258 = vst.msk [vmem:[#allocation3] sm:$0xff] (!%p1833_p8), %vm257_vm0, %v2152_v0  ;;  %259 = vst.msk [vmem:[#allocation3 + $0x8] sm:$0xff] (!%p1833_p8), %vm257_vm0, %v2152_v0 }
  0x22   : > { %s237_s4 = sadd.s32 %s1830_s23, %s1829_s30  ;;  %261 = vst.msk [vmem:[#allocation2] sm:$0x7] (!%p1833_p8), %vm260_vm1, %v2153_v1  ;;  %262 = vst.msk [vmem:[#allocation2 + $0x4] sm:$0x7] (!%p1833_p8), %vm260_vm1, %v2153_v1 }
  0x23   : > { %s1831_s5 = sshll.u32 %s237_s4, 1  ;;  %263 = vst.msk [vmem:[#allocation2 + $0x8] sm:$0x7] (!%p1833_p8), %vm260_vm1, %v2153_v1  ;;  %264 = vst.msk [vmem:[#allocation2 + $0xc] sm:$0x7] (!%p1833_p8), %vm260_vm1, %v2153_v1 }
  0x24   : > { %s239_s26 = scalar_lea.vmem %s2582_s0, %s1831_s5  ;;  %265 = vst.msk [vmem:[#allocation2 + $0x10] sm:$0x7] (!%p1833_p8), %vm260_vm1, %v2153_v1  ;;  %266 = vst.msk [vmem:[#allocation2 + $0x14] sm:$0x7] (!%p1833_p8), %vm260_vm1, %v2153_v1 }
  0x28 PF: > { %268 = sbr.rel (%p2290_p5) target bundleno = 424 (0x1a8), region = 40  ;;  %v1834_v2 = vld.sshfl [vmem:[%s239_s26] sm:$0x3 pattern:$0x76325410] (!%p2290_p5)  ;;  %vm338_vm2 = vcmask (!%p2290_p5), 26624   ;;  %v845_v12 = vlaneseq (!%p2290_p5) }
  0x29   : > { %v1835_v3 = vld.sshfl [vmem:[%s239_s26 + $0x2] sm:$0x3 pattern:$0x76325410] (!%p2290_p5)  ;;  %v306_v4 = vshrl.u32 (!%p2290_p5), %v1834_v2, 16  ;;  %v309_v5 = vshll.u32 (!%p2290_p5), %v1834_v2, 16 }
  0x2a   : > { %v1836_v6 = vld.sshfl [vmem:[%s239_s26 + $0x4] sm:$0x3 pattern:$0x76325410] (!%p2290_p5)  ;;  %v313_v7 = vshrl.u32 (!%p2290_p5), %v1835_v3, 16  ;;  %v316_v8 = vshll.u32 (!%p2290_p5), %v1835_v3, 16 }
  0x2b   : > { %v1837_v9 = vld.sshfl [vmem:[%s239_s26 + $0x6] sm:$0x3 pattern:$0x76325410] (!%p2290_p5)  ;;  %v308_v10 = vrot.slane (!%p2290_p5), %v306_v4, 7  ;;  %v320_v11 = vshrl.u32 (!%p2290_p5), %v1836_v6, 16 }
  0x2c   : > { %v315_v13 = vrot.slane (!%p2290_p5), %v313_v7, 7  ;;  %v323_v14 = vshll.u32 (!%p2290_p5), %v1836_v6, 16  ;;  %v327_v15 = vshrl.u32 (!%p2290_p5), %v1837_v9, 16  ;;  %v330_v16 = vshll.u32 (!%p2290_p5), %v1837_v9, 16  ;;  %v341_v17 = vld [vmem:[#allocation2 + $0x4] sm:$0x7] (!%p2290_p5) }
  0x2d   : > { %v311_v18 = vor.u32 (!%p2290_p5), %v309_v5, %v308_v10  ;;  %v322_v19 = vrot.slane (!%p2290_p5), %v320_v11, 7  ;;  %vm339_vm3 = vsmask.f32 (!%p2290_p5), 2306  ;;  %v344_v20 = vld [vmem:[#allocation2 + $0x8] sm:$0x7] (!%p2290_p5)  ;;  %vm500_vm5 = vcmask (!%p2290_p5), 1040384  }
  0x2e   : > { %v318_v21 = vor.u32 (!%p2290_p5), %v316_v8, %v315_v13  ;;  %v329_v22 = vrot.slane (!%p2290_p5), %v327_v15, 7  ;;  %vm2302_vm4 = vmand (!%p2290_p5), %vm338_vm2, %vm339_vm3  ;;  %v347_v24 = vld [vmem:[#allocation2 + $0xc] sm:$0x7] (!%p2290_p5)  ;;  %v350_v25 = vld [vmem:[#allocation2 + $0x10] sm:$0x7] (!%p2290_p5)  ;;  %v846_v33 = vshrl.u32 (!%p2290_p5), %v845_v12, 7 }
  0x2f   : > { %v325_v26 = vor.u32 %v323_v14, %v322_v19  ;;  %v342_v27 = vsel %vm2302_vm4, %v311_v18, %v341_v17  ;;  %v1842_v28 = vld.sshfl [vmem:[#allocation2] sm:$0x12 pattern:$0x76325410]  ;;  %v2154_v31 = vmov 1983009808  }
  0x30   : > { %v332_v29 = vor.u32 %v330_v16, %v329_v22  ;;  %343 = vst [vmem:[#allocation2 + $0x4] sm:$0x7] %v342_v27  ;;  %v345_v30 = vsel %vm2302_vm4, %v318_v21, %v344_v20  ;;  %v843_v32 = vunpack.c.l.s4 %v2154_v31  ;;  %v475_v35 = vcombine.high %v1842_v28, %v1842_v28  ;;  %v1838_v38 = vld.sshfl [vmem:[#allocation2] sm:$0x13 pattern:$0x76325410] }
  0x31   : > { %346 = vst [vmem:[#allocation2 + $0x8] sm:$0x7] %v345_v30  ;;  %v348_v34 = vsel %vm2302_vm4, %v325_v26, %v347_v24  ;;  %vm501_vm6 = vcmask 1042434   ;;  %vm503_vm7 = vcmask 1044484   ;;  %vm505_vm10 = vcmask 1046534   ;;  %s1900_s26 = smul.u32 20, %s2126_s15 }
  0x32   : > { %349 = vst [vmem:[#allocation2 + $0xc] sm:$0x7] %v348_v34  ;;  %v351_v36 = vsel %vm2302_vm4, %v332_v29, %v350_v25  ;;  %v844_v37 = vunpack.c.0.s8 %v843_v32  ;;  %vm502_vm8 = vmor %vm500_vm5, %vm501_vm6  ;;  %v1846_v39 = vrot.slane %v1842_v28, 9  ;;  %v372_v40 = vcombine.high %v1838_v38, %v1838_v38  ;;  %s2155_s22 = smov 12   ;;  %s2156_s23 = smov 24  }
  0x33   : > { %352 = vst [vmem:[#allocation2 + $0x10] sm:$0x7] %v351_v36  ;;  %vm504_vm9 = vmor %vm502_vm8, %vm503_vm7  ;;  %vm397_vm11 = vsmask.f32 1280  ;;  %vm398_vm12 = vsmask.f32 3336  ;;  %s2350_s11 = scalar_lea.vmem %s2583_s1, %s1900_s26 }
  0x34   : > { %vm400_vm13 = vsmask.f32 5392  ;;  %v405_v41 = vshrl.u32 %v1838_v38, 16  ;;  %v408_v42 = vshll.u32 %v1838_v38, 16  ;;  %v2315_v43 = vsub.s32 %v844_v37, %v846_v33  ;;  %vm2319_vm14 = vmor %vm504_vm9, %vm505_vm10  ;;  %s2157_s29 = smov 8   ;;  %s2159_s30 = smov 4  }
  0x35   : > { %v509_v44 = vrot.slane %v475_v35, 7  ;;  %v414_v45 = vshll.u32 %v372_v40, 16  ;;  %v2317_v46 = vld.sshfl [vmem:[#allocation2 + $0x14] sm:$0x13 pattern:$0x76325410]  ;;  %vm399_vm0 = vmor %vm397_vm11, %vm398_vm12 }
  0x36   : > { %vm402_vm15 = vsmask.f32 7448  ;;  %v407_v48 = vrot.slane %v405_v41, 6  ;;  %v410_v49 = vrot.slane %v408_v42, 7  ;;  %v767_v50 = vshrl.u32 %v2317_v46, 16  ;;  %vm401_vm1 = vmor %vm399_vm0, %vm400_vm13  ;;  %s2160_s4 = smov 16  }
  0x37   : > { %v1843_v51 = vld.sshfl [vmem:[#allocation2 + $0x4] sm:$0x12 pattern:$0x76325410]  ;;  %v416_v55 = vrot.slane %v414_v45, 7  ;;  %v510_v57 = vsel %vm2319_vm14, %v1846_v39, %v509_v44  ;;  %vm2335_vm2 = vmor %vm401_vm1, %vm402_vm15  ;;  %v723_v9 = vcombine.high %v2317_v46, %v2317_v46  ;;  %vm1070_vm3 = vcmask 1041408  }
  0x38   : > { %v2034_v52 = vld.sshfl [vmem:[#allocation2 + $0x4] sm:$0xf pattern:$0x76325410]  ;;  %v483_v53 = vcombine.high %v1843_v51, %v1843_v51  ;;  %v1847_v54 = vrot.slane %v1843_v51, 9  ;;  %v411_v58 = vor.u32 %v410_v49, %v407_v48  ;;  %v2345_v14 = vrot.slane %v767_v50, 6 }
  0x39   : > { %v1844_v56 = vld.sshfl [vmem:[#allocation2 + $0x8] sm:$0x12 pattern:$0x76325410]  ;;  %s2161_s5 = smov 20   ;;  %vm2162_vm4 = vmmov 0  }
  0x3a   : > { %v2035_v59 = vld.sshfl [vmem:[#allocation2 + $0xc] sm:$0xf pattern:$0x76325410]  ;;  %v491_v60 = vcombine.high %v1844_v56, %v1844_v56  ;;  %v513_v61 = vrot.slane %v483_v53, 7  ;;  %v1848_v62 = vrot.slane %v1844_v56, 9 }
  0x3b   : > { %v1845_v63 = vld.sshfl [vmem:[#allocation2 + $0xc] sm:$0x12 pattern:$0x76325410]  ;;  %v412_v8 = vrot.slane %v411_v58, 2  ;;  %v915_v10 = vcombine.low %v2034_v52, %v2035_v59  ;;  %s2163_s8 = smov 32  }
  0x3c   : > { %v499_v0 = vcombine.high %v1845_v63, %v1845_v63  ;;  %v2330_v1 = vsel %vm2319_vm14, %v1847_v54, %v513_v61  ;;  %v517_v2 = vrot.slane %v491_v60, 7  ;;  %v1849_v3 = vrot.slane %v1845_v63, 9  ;;  %v2036_v5 = vld.sshfl [vmem:[#allocation2 + $0x8] sm:$0xf pattern:$0x76325410] }
  0x3d   : > { %v876_v4 = vcombine.low %v510_v57, %v2330_v1  ;;  %v2037_v6 = vld.sshfl [vmem:[#allocation2 + $0x10] sm:$0xf pattern:$0x76325410]  ;;  %916 = vrot.lane.b32.xlu1 %v915_v10, %s2155_s22  ;;  %v417_v21 = vsel %vm2335_vm2, %v412_v8, %v416_v55  ;;  %s2164_s26 = smov 28   ;;  %vm1017_vm5 = vcmask 31744  }
  0x3e   : > { %v2343_v11 = vsel %vm2319_vm14, %v1848_v62, %v517_v2  ;;  %v521_v12 = vrot.slane %v499_v0, 7  ;;  %v1839_v13 = vld.sshfl [vmem:[#allocation2 + $0x4] sm:$0x13 pattern:$0x76325410]  ;;  %v976_v24 = vcombine.low %v2036_v5, %v2037_v6  ;;  %vm1021_vm6 = vcmask 64512  }
  0x3f   : > { %v884_v15 = vrot.slane %v876_v4, %v2315_v43  ;;  %v1840_v16 = vld.sshfl [vmem:[#allocation2 + $0x8] sm:$0x13 pattern:$0x76325410]  ;;  %v380_v17 = vcombine.high %v1839_v13, %v1839_v13  ;;  %v419_v22 = vshrl.u32 %v1839_v13, 16  ;;  %v422_v26 = vshll.u32 %v1839_v13, 16 }
  0x40   : > { %v2355_v18 = vsel %vm2319_vm14, %v1849_v3, %v521_v12  ;;  %v1841_v19 = vld.sshfl [vmem:[#allocation2 + $0xc] sm:$0x13 pattern:$0x76325410]  ;;  %v388_v20 = vcombine.high %v1840_v16, %v1840_v16  ;;  %v433_v29 = vshrl.u32 %v1840_v16, 16  ;;  %v436_v30 = vshll.u32 %v1840_v16, 16 }
  0x41   : > { %v877_v23 = vcombine.low %v2343_v11, %v2355_v18  ;;  %v396_v25 = vcombine.high %v1841_v19, %v1841_v19  ;;  %v421_v27 = vrot.slane %v419_v22, 6  ;;  %v428_v28 = vshll.u32 %v380_v17, 16  ;;  %v1853_v31 = vld.sshfl [vmem:[#allocation2 + $0x10] sm:$0x13 pattern:$0x76325410]  ;;  %977 = vrot.lane.b32.xlu1 %v976_v24, %s2156_s23 }
  0x42   : > { %v424_v33 = vrot.slane %v422_v26, 7  ;;  %v442_v34 = vshll.u32 %v388_v20, 16  ;;  %v447_v35 = vshrl.u32 %v1841_v19, 16  ;;  %v435_v37 = vrot.slane %v433_v29, 6 }
  0x43   : > { %v2362_v32 = vrot.slane %v877_v23, %v2315_v43  ;;  %v430_v36 = vrot.slane %v428_v28, 7  ;;  %v438_v38 = vrot.slane %v436_v30, 7  ;;  %v450_v39 = vshll.u32 %v1841_v19, 16 }
  0x44   : > { %v425_v41 = vor.u32 %v424_v33, %v421_v27  ;;  %v444_v42 = vrot.slane %v442_v34, 7  ;;  %v449_v44 = vrot.slane %v447_v35, 6  ;;  %v1857_v45 = vld.sshfl [vmem:[#allocation2 + $0x10] sm:$0x12 pattern:$0x76325410]  ;;  %v566_v51 = vcombine.high %v1853_v31, %v1853_v31 }
  0x45   : > { %v892_v40 = vcombine.low %v884_v15, %v2362_v32  ;;  %v439_v48 = vor.u32 %v438_v38, %v435_v37  ;;  %v452_v49 = vrot.slane %v450_v39, 7  ;;  %v456_v50 = vshll.u32 %v396_v25, 16  ;;  %v1869_v17 = vld.sshfl [vmem:[#allocation2 + $0x14] sm:$0x12 pattern:$0x76325410] }
  0x46   : > { %v426_v52 = vrot.slane %v425_v41, 2  ;;  %v610_v53 = vshrl.u32 %v1853_v31, 16  ;;  %v613_v54 = vshll.u32 %v1853_v31, 16  ;;  %v662_v55 = vcombine.high %v1857_v45, %v1857_v45  ;;  %v2029_v25 = vld [vmem:[%s2350_s11] sm:$0xff]  }
  0x47   : > { %893 = vrot.lane.b32.xlu0 %v892_v40, %s2157_s29  ;;  %v440_v56 = vrot.slane %v439_v48, 2  ;;  %v453_v57 = vor.u32 %v452_v49, %v449_v44  ;;  %v458_v58 = vrot.slane %v456_v50, 7  ;;  %v619_v59 = vshll.u32 %v566_v51, 16  ;;  %v2033_v39 = vld [vmem:[%s2350_s11 + $0x10] ss:$0 sps:$4 sm:$0x33]  }
  0x48   : > { %v431_v60 = vsel %vm2335_vm2, %v426_v52, %v430_v36  ;;  %v612_v61 = vrot.slane %v610_v53, 6  ;;  %v615_v62 = vrot.slane %v613_v54, 7  ;;  %v1861_v63 = vrot.slane %v1857_v45, 9  ;;  %v2032_v36 = vld [vmem:[%s2350_s11 + $0x8] sm:$0xff]  }
  0x49   : > { %v445_v0 = vsel %vm2335_vm2, %v440_v56, %v444_v42  ;;  %v454_v2 = vrot.slane %v453_v57, 2  ;;  %v857_v3 = vcombine.low %v417_v21, %v431_v60  ;;  %v621_v4 = vrot.slane %v619_v59, 7  ;;  %v2038_v49 = vld.sshfl [vmem:[#allocation2 + $0x8] sm:$0xf pattern:$0x76325410] }
  0x4a   : > { %v616_v5 = vor.u32 %v615_v62, %v612_v61  ;;  %v918_v6 = vcombine.low %v431_v60, %v445_v0  ;;  %v677_v8 = vrot.slane %v662_v55, 7  ;;  %v937_v10 = vcombine.low %v2330_v1, %v2343_v11  ;;  %v2039_v50 = vld.sshfl [vmem:[#allocation2] sm:$0xf pattern:$0x76325410] }
  0x4b   : > { %v459_v12 = vsel %vm2335_vm2, %v454_v2, %v458_v58  ;;  %v865_v13 = vrot.slane %v857_v3, %v2315_v43  ;;  %v770_v15 = vshll.u32 %v2317_v46, 16  ;;  %v776_v16 = vshll.u32 %v723_v9, 16  ;;  %v1042_v3 = vld [vmem:[#allocation3] sm:$0xff] }
  0x4c   : > { %v858_v19 = vcombine.low %v445_v0, %v459_v12  ;;  %v617_v20 = vrot.slane %v616_v5, 2  ;;  %v926_v21 = vrot.slane %v918_v6, %v2315_v43  ;;  %v678_v22 = vsel %vm2319_vm14, %v1861_v63, %v677_v8  ;;  %v1043_v5 = vld [vmem:[#allocation3 + $0x8] sm:$0xff] }
  0x4d   : > { %v938_v1 = vcombine.low %v2355_v18, %v678_v22  ;;  %v945_v11 = vrot.slane %v937_v10, %v2315_v43  ;;  %v772_v23 = vrot.slane %v770_v15, 7  ;;  %v778_v24 = vrot.slane %v776_v16, 7 }
  0x4e   : > { %v872_v26 = vrot.slane %v858_v19, %v2315_v43  ;;  %v622_v46 = vsel %vm2335_vm2, %v617_v20, %v621_v4  ;;  %v819_v9 = vcombine.high %v1869_v17, %v1869_v17  ;;  %v1873_v27 = vrot.slane %v1869_v17, 9 }
  0x4f   : > { %v919_v28 = vcombine.low %v459_v12, %v622_v46  ;;  %v952_v29 = vrot.slane %v938_v1, %v2315_v43  ;;  %v773_v30 = vor.u32 %v772_v23, %v2345_v14  ;;  %v2158_v33 = vmov 0.0  }
  0x50   : > { %v873_v18 = vcombine.low %v865_v13, %v872_v26  ;;  %v834_v31 = vrot.slane %v819_v9, 7  ;;  %1905 = vmatprep.subr.bf16.mxu0 %v2158_v33  ;;  %v1072_v47 = vsel %vm1070_vm3, %v2033_v39, 0  ;;  %1911 = vmatprep.mubr.msk.bf16.mxu0 %vm2162_vm4, %v2158_v33  ;;  %v856_v54 = vcombine.low %v2039_v50, %v2038_v49 }
  0x51   : > { %v933_v34 = vrot.slane %v919_v28, %v2315_v43  ;;  %v774_v35 = vrot.slane %v773_v30, 2  ;;  %1906 = vmatpush3.bf16.msra.mxu0 %v2029_v25  ;;  %v953_v37 = vcombine.low %v945_v11, %v952_v29  ;;  %vm1024_vm7 = vcmask 97280  }
  0x52   : > { %874 = vrot.lane.b32.xlu0 %v873_v18, %s2159_s30  ;;  %v835_v38 = vsel %vm2319_vm14, %v1873_v27, %v834_v31  ;;  %1907 = vmatprep.subr.bf16.mxu0 %v2158_v33  ;;  %vm1027_vm8 = vcmask 130048   ;;  %vm1030_vm9 = vcmask 162816   ;;  %vm1033_vm10 = vcmask 195584  }
  0x53   : > { %v934_v40 = vcombine.low %v926_v21, %v933_v34  ;;  %v779_v14 = vsel %vm2335_vm2, %v774_v35, %v778_v24  ;;  %v999_v41 = vcombine.low %v678_v22, %v835_v38  ;;  %vm1036_vm11 = vcmask 228352  }
  0x54   : > { %v980_v42 = vcombine.low %v622_v46, %v779_v14  ;;  %vm1039_vm12 = vcmask 261120   ;;  %vm1067_vm13 = vcmask 293888  }
  0x55   : > { %935 = vrot.lane.b32.xlu1 %v934_v40, %s2160_s4  ;;  %v1013_v44 = vrot.slane %v999_v41, %v2315_v43  ;;  %1908 = vmatpush3.bf16.msra.mxu0 %v2032_v36 }
  0x56   : > { %954 = vrot.lane.b32.xlu0 %v953_v37, %s2161_s5  ;;  %v994_v45 = vrot.slane %v980_v42, %v2315_v43  ;;  %1909 = vmatprep.subr.bf16.mxu0 %v2158_v33 }
  0x57   : > { %v1014_v48 = vcombine.low %v2362_v32, %v1013_v44 }
  0x58   : > { %v995_v7 = vcombine.low %v872_v26, %v994_v45 }
  0x59   : > { %1015 = vrot.lane.b32.xlu1 %v1014_v48, %s2163_s8  ;;  %1910 = vmatpush3.bf16.msra.mxu0 %v1072_v47 }
  0x5a   : > { %996 = vrot.lane.b32.xlu0 %v995_v7, %s2164_s26 }
  0xaf   : > { %v917_v51 = vpop.permute.xlu1 %916 }
  0xb3   : > { %v978_v53 = vpop.permute.xlu1 %977 }
  0xb9   : > { %v894_v52 = vpop.permute.xlu0 %893 }
  0xc4   : > { %v875_v43 = vpop.permute.xlu0 %874 }
  0xc5   : > { %v1020_v32 = vsel %vm1017_vm5, %v856_v54, %v875_v43 }
  0xc6   : > { %v1023_v55 = vsel %vm1021_vm6, %v1020_v32, %v894_v52 }
  0xc7   : > { %v936_v56 = vpop.permute.xlu1 %935  ;;  %v1026_v57 = vsel %vm1024_vm7, %v1023_v55, %v917_v51 }
  0xc8   : > { %v1029_v58 = vsel %vm1027_vm8, %v1026_v57, %v936_v56  ;;  %v955_v59 = vpop.permute.xlu0 %954 }
  0xc9   : > { %v1032_v60 = vsel %vm1030_vm9, %v1029_v58, %v955_v59 }
  0xca   : > { %v1035_v63 = vsel %vm1033_vm10, %v1032_v60, %v978_v53 }
  0xcb   : > { %v1016_v61 = vpop.permute.xlu1 %1015 }
  0xcc   : > { %v997_v62 = vpop.permute.xlu0 %996 }
  0xcd   : > { %v1038_v0 = vsel %vm1036_vm11, %v1035_v63, %v997_v62 }
  0xce   : > { %v1041_v2 = vsel %vm1039_vm12, %v1038_v0, %v1016_v61 }
  0xcf   : > { %1912 = vmatmul.mubr.msk.bf16.vlgmr.msra.gmra.mrb[0].mxu0 %vm1067_vm13, %v1041_v2 }
 0x1a2   : > { %v1108_v4 = vpop.f32.mrb[0].mxu0 }
 0x1a3   : > { %v1115_v6 = vadd.f32 %v1108_v4, %v1042_v3  ;;  %v1913_v8 = vpop.f32.mrb[1].mxu0 }
 0x1a4   : > { %v1111_v10 = vpop.f32.mrb[2].mxu0 }
 0x1a5   : > { %1117 = vst.msk [vmem:[#allocation3] sm:$0xff] %vm1017_vm5, %v1115_v6  ;;  %v1116_v12 = vadd.f32 %v1111_v10, %v1043_v5  ;;  %v1914_v13 = vpop.f32.mrb[3].mxu0 }
 0x1a7   : > { %1118 = vst.msk [vmem:[#allocation3 + $0x8] sm:$0xff] %vm1017_vm5, %v1116_v12 }
 0x1a8 PF: > { %p1879_p9 = scmp.ne.s32.totalorder %s2126_s15, 4 }
 0x1a9   : > { %v1880_v17 = vld [vmem:[%s2584_s2] ss:$0 sm:$0xff] (!%p1879_p9)  ;;  %v1142_v19 = vlaneseq (!%p1879_p9)  ;;  %v2165_v22 = vmov (!%p1879_p9), 1966171168   ;;  %v2166_v26 = vmov (!%p1879_p9), 1934713408  }
 0x1aa   : > { %1122 = sbr.rel (%p1879_p9) target bundleno = 593 (0x251), region = 44  ;;  %v1140_v1 = vunpack.c.l.s4 (!%p1879_p9), %v2165_v22  ;;  %v1351_v46 = vunpack.c.l.s4 (!%p1879_p9), %v2166_v26  ;;  %v2167_v9 = vmov (!%p1879_p9), 1983009808   ;;  %vm1332_vm14 = vcmask (!%p1879_p9), 1040384   ;;  %s2168_s15 = smov (!%p1879_p9), 4  }
 0x1ab   : > { %v1143_v11 = vshrl.u32 (!%p1879_p9), %v1142_v19, 7  ;;  %v1500_v27 = vunpack.c.l.s4 (!%p1879_p9), %v2167_v9  ;;  %s2169_s11 = smov (!%p1879_p9), 12   ;;  %s2170_s22 = smov (!%p1879_p9), 8   ;;  %vm1683_vm15 = vcmask (!%p1879_p9), 31744   ;;  %vm1685_vm0 = vcmask (!%p1879_p9), 64512  }
 0x1ac   : > { %v1123_v15 = vld [vmem:[#allocation3] sm:$0xff] (!%p1879_p9)  ;;  %v1141_v25 = vunpack.c.0.s8 (!%p1879_p9), %v1140_v1  ;;  %v1352_v18 = vunpack.c.0.s8 (!%p1879_p9), %v1351_v46  ;;  %s2171_s23 = smov (!%p1879_p9), 16   ;;  %s2172_s29 = smov (!%p1879_p9), 20   ;;  %vm1687_vm1 = vcmask (!%p1879_p9), 97280   ;;  %vm1689_vm2 = vcmask (!%p1879_p9), 130048  }
 0x1ad   : > { %v1132_v20 = vadd.f32 (!%p1879_p9), %v1880_v17, %v1123_v15  ;;  %v2406_v31 = vsub.s32 (!%p1879_p9), 0, %v1143_v11  ;;  %v1501_v33 = vunpack.c.0.s8 (!%p1879_p9), %v1500_v27  ;;  %s2173_s30 = smov (!%p1879_p9), 24   ;;  %s2174_s4 = smov (!%p1879_p9), 28   ;;  %vm1691_vm3 = vcmask (!%p1879_p9), 162816  }
 0x1ae   : > { %v1124_v16 = vld [vmem:[#allocation3 + $0x8] sm:$0xff] (!%p1879_p9)  ;;  %v1144_v29 = vsub.s32 (!%p1879_p9), %v1141_v25, %v1143_v11  ;;  %v2408_v38 = vsub.s32 (!%p1879_p9), %v1352_v18, %v1143_v11  ;;  %vm1693_vm4 = vcmask (!%p1879_p9), 195584   ;;  %vm1695_vm5 = vcmask (!%p1879_p9), 228352  }
 0x1af   : > { %v1133_v21 = vadd.f32 (!%p1879_p9), %v1880_v17, %v1124_v16  ;;  %v1134_v23 = vmax.f32 (!%p1879_p9), %v1132_v20, 0.0  ;;  %v2410_v39 = vsub.s32 (!%p1879_p9), %v1501_v33, %v1143_v11  ;;  %vm1698_vm6 = vcmask (!%p1879_p9), 257024  }
 0x1b1   : > { %v1135_v24 = vmax.f32 %v1133_v21, 0.0  ;;  %v1138_v28 = vcombine.high %v1134_v23, %v1134_v23  ;;  %v1145_v34 = vrot.slane %v1134_v23, %v1144_v29 }
 0x1b3   : > { %v1187_v30 = vcombine.high %v1135_v24, %v1135_v24  ;;  %v1152_v35 = vrot.slane %v1138_v28, %v1144_v29  ;;  %v1194_v36 = vrot.slane %v1135_v24, %v1144_v29  ;;  %v1161_v40 = vrot.slane %v1145_v34, %v1144_v29 }
 0x1b4   : > { %v1153_v44 = vcombine.high %v1145_v34, %v1145_v34 }
 0x1b5   : > { %v1201_v37 = vrot.slane %v1187_v30, %v1144_v29  ;;  %v1168_v14 = vrot.slane %v1152_v35, %v1144_v29  ;;  %v1210_v41 = vrot.slane %v1194_v36, %v1144_v29  ;;  %v1154_v45 = vcombine.high %v1152_v35, %v1152_v35 }
 0x1b6   : > { %v1202_v47 = vcombine.high %v1194_v36, %v1194_v36  ;;  %v1255_v7 = vrot.slane %v1161_v40, %v2406_v31  ;;  %v2416_v52 = vrot.slane %v1153_v44, %v1144_v29  ;;  %v1183_v24 = vcombine.high %v1161_v40, %v1161_v40 }
 0x1b7   : > { %v1217_v42 = vrot.slane %v1201_v37, %v1144_v29  ;;  %v1203_v48 = vcombine.high %v1201_v37, %v1201_v37  ;;  %v1271_v49 = vrot.slane %v1168_v14, %v2406_v31  ;;  %v1287_v50 = vrot.slane %v1210_v41, %v2406_v31 }
 0x1b8   : > { %v2418_v53 = vrot.slane %v1154_v45, %v1144_v29  ;;  %v2420_v54 = vrot.slane %v1202_v47, %v1144_v29  ;;  %v1333_v32 = vsel %vm1332_vm14, %v1161_v40, %v1255_v7  ;;  %v1259_v62 = vrot.slane %v2416_v52, %v2406_v31 }
 0x1b9   : > { %v1303_v51 = vrot.slane %v1217_v42, %v2406_v31  ;;  %v2422_v43 = vrot.slane %v1203_v48, %v1144_v29  ;;  %v1337_v55 = vsel %vm1332_vm14, %v1168_v14, %v1271_v49  ;;  %v1341_v56 = vsel %vm1332_vm14, %v1210_v41, %v1287_v50 }
 0x1ba   : > { %v1349_v58 = vcombine.low %v1333_v32, %v1333_v32  ;;  %v1358_v59 = vcombine.low %v1337_v55, %v1337_v55  ;;  %v1367_v60 = vcombine.low %v1341_v56, %v1341_v56  ;;  %v1275_v63 = vrot.slane %v2418_v53, %v2406_v31 }
 0x1bb   : > { %v1345_v57 = vsel %vm1332_vm14, %v1217_v42, %v1303_v51  ;;  %v1291_v0 = vrot.slane %v2420_v54, %v2406_v31  ;;  %v1307_v2 = vrot.slane %v2422_v43, %v2406_v31  ;;  %v1334_v8 = vsel %vm1332_vm14, %v2416_v52, %v1259_v62 }
 0x1bc   : > { %v1376_v61 = vcombine.low %v1345_v57, %v1345_v57  ;;  %v2437_v3 = vrot.slane %v1349_v58, %v2408_v38  ;;  %v2440_v4 = vrot.slane %v1358_v59, %v2408_v38  ;;  %v2443_v5 = vrot.slane %v1367_v60, %v2408_v38 }
 0x1bd   : > { %v1338_v10 = vsel %vm1332_vm14, %v2418_v53, %v1275_v63  ;;  %v1342_v12 = vsel %vm1332_vm14, %v2420_v54, %v1291_v0  ;;  %v1346_v13 = vsel %vm1332_vm14, %v2422_v43, %v1307_v2  ;;  %v1385_v20 = vcombine.low %v1334_v8, %v1334_v8 }
 0x1be   : > { %v2446_v6 = vrot.slane %v1376_v61, %v2408_v38  ;;  %v1881_v16 = vcombine.high %v2437_v3, %v2440_v4  ;;  %v1497_v19 = vcombine.low %v2437_v3, %v2440_v4  ;;  %v1394_v21 = vcombine.low %v1338_v10, %v1338_v10 }
 0x1bf   : > { %v1403_v22 = vcombine.low %v1342_v12, %v1342_v12  ;;  %v1412_v1 = vcombine.low %v1346_v13, %v1346_v13  ;;  %v1184_v25 = vcombine.high %v1168_v14, %v1168_v14  ;;  %v1392_v26 = vrot.slane %v1385_v20, %v2408_v38 }
 0x1c0   : > { %v1498_v15 = vcombine.low %v2443_v5, %v2446_v6  ;;  %v1882_v17 = vcombine.high %v2443_v5, %v2446_v6  ;;  %v1527_v11 = vrot.slane %v1881_v16, %v2410_v39  ;;  %v1401_v46 = vrot.slane %v1394_v21, %v2408_v38 }
 0x1c1   : > { %v1410_v9 = vrot.slane %v1403_v22, %v2408_v38  ;;  %v1419_v27 = vrot.slane %v1412_v1, %v2408_v38  ;;  %v1232_v29 = vcombine.high %v1210_v41, %v1210_v41  ;;  %v1233_v30 = vcombine.high %v1217_v42, %v1217_v42 }
 0x1c2   : > { %v1534_v23 = vrot.slane %v1882_v17, %v2410_v39  ;;  %v1263_v18 = vrot.slane %v1183_v24, %v2406_v31  ;;  %v1883_v33 = vcombine.high %v1392_v26, %v1401_v46  ;;  %v1543_v35 = vcombine.low %v1392_v26, %v1401_v46 }
 0x1c3   : > { %v1884_v34 = vcombine.high %v1410_v9, %v1419_v27  ;;  %v1544_v36 = vcombine.low %v1410_v9, %v1419_v27  ;;  %v1279_v37 = vrot.slane %v1184_v25, %v2406_v31  ;;  %v1295_v40 = vrot.slane %v1232_v29, %v2406_v31 }
 0x1c4   : > { %v1535_v28 = vcombine.low %v1527_v11, %v1534_v23  ;;  %v1311_v14 = vrot.slane %v1233_v30, %v2406_v31  ;;  %v1335_v44 = vsel %vm1332_vm14, %v1183_v24, %v1263_v18  ;;  %v1575_v45 = vrot.slane %v1883_v33, %v2410_v39 }
 0x1c5   : > { %v1582_v41 = vrot.slane %v1884_v34, %v2410_v39  ;;  %v1551_v42 = vrot.slane %v1543_v35, %v2410_v39  ;;  %v1558_v47 = vrot.slane %v1544_v36, %v2410_v39  ;;  %v1339_v48 = vsel %vm1332_vm14, %v1184_v25, %v1279_v37 }
 0x1c6   : > { %1536 = vrot.lane.b32.xlu0 %v1535_v28, %s2168_s15  ;;  %v1343_v7 = vsel %vm1332_vm14, %v1232_v29, %v1295_v40  ;;  %v1347_v49 = vsel %vm1332_vm14, %v1233_v30, %v1311_v14  ;;  %v1421_v50 = vcombine.low %v1335_v44, %v1335_v44  ;;  %v1430_v55 = vcombine.low %v1339_v48, %v1339_v48 }
 0x1c7   : > { %v1583_v51 = vcombine.low %v1575_v45, %v1582_v41  ;;  %v1559_v32 = vcombine.low %v1551_v42, %v1558_v47  ;;  %v1439_v56 = vcombine.low %v1343_v7, %v1343_v7  ;;  %v1448_v58 = vcombine.low %v1347_v49, %v1347_v49 }
 0x1c8   : > { %v1428_v57 = vrot.slane %v1421_v50, %v2408_v38  ;;  %v1185_v59 = vcombine.high %v2416_v52, %v2416_v52  ;;  %v1186_v60 = vcombine.high %v2418_v53, %v2418_v53  ;;  %v1437_v61 = vrot.slane %v1430_v55, %v2408_v38 }
 0x1c9   : > { %1584 = vrot.lane.b32.xlu1 %v1583_v51, %s2169_s11  ;;  %v1446_v62 = vrot.slane %v1439_v56, %v2408_v38  ;;  %v1234_v63 = vcombine.high %v2420_v54, %v2420_v54  ;;  %v1455_v0 = vrot.slane %v1448_v58, %v2408_v38  ;;  %v1235_v2 = vcombine.high %v2422_v43, %v2422_v43 }
 0x1ca   : > { %1560 = vrot.lane.b32.xlu0 %v1559_v32, %s2170_s22  ;;  %v1267_v52 = vrot.slane %v1185_v59, %v2406_v31  ;;  %v1283_v53 = vrot.slane %v1186_v60, %v2406_v31  ;;  %v1591_v5 = vcombine.low %v1428_v57, %v1437_v61  ;;  %v1885_v6 = vcombine.high %v1428_v57, %v1437_v61 }
 0x1cb   : > { %v1299_v8 = vrot.slane %v1234_v63, %v2406_v31  ;;  %v1512_v10 = vrot.slane %v1498_v15, %v2410_v39  ;;  %v1592_v12 = vcombine.low %v1446_v62, %v1455_v0  ;;  %v1886_v13 = vcombine.high %v1446_v62, %v1455_v0 }
 0x1cc   : > { %v1315_v16 = vrot.slane %v1235_v2, %v2406_v31  ;;  %v1336_v54 = vsel %vm1332_vm14, %v1185_v59, %v1267_v52  ;;  %v1599_v17 = vrot.slane %v1591_v5, %v2410_v39  ;;  %v1623_v43 = vrot.slane %v1885_v6, %v2410_v39 }
 0x1cd   : > { %v1340_v20 = vsel %vm1332_vm14, %v1186_v60, %v1283_v53  ;;  %v1344_v21 = vsel %vm1332_vm14, %v1234_v63, %v1299_v8  ;;  %v1606_v22 = vrot.slane %v1592_v12, %v2410_v39  ;;  %v1630_v1 = vrot.slane %v1886_v13, %v2410_v39 }
 0x1ce   : > { %v1348_v15 = vsel %vm1332_vm14, %v1235_v2, %v1315_v16  ;;  %v1457_v11 = vcombine.low %v1336_v54, %v1336_v54  ;;  %v1466_v23 = vcombine.low %v1340_v20, %v1340_v20  ;;  %v1475_v24 = vcombine.low %v1344_v21, %v1344_v21 }
 0x1cf   : > { %v1484_v31 = vcombine.low %v1348_v15, %v1348_v15  ;;  %v1505_v25 = vrot.slane %v1497_v19, %v2410_v39  ;;  %v1607_v26 = vcombine.low %v1599_v17, %v1606_v22  ;;  %v1631_v46 = vcombine.low %v1623_v43, %v1630_v1 }
 0x1d0   : > { %v1464_v9 = vrot.slane %v1457_v11, %v2408_v38  ;;  %v1473_v27 = vrot.slane %v1466_v23, %v2408_v38  ;;  %v1482_v28 = vrot.slane %v1475_v24, %v2408_v38 }
 0x1d1   : > { %v1491_v29 = vrot.slane %v1484_v31, %v2408_v38  ;;  %v1513_v30 = vcombine.low %v1505_v25, %v1512_v10  ;;  %1608 = vrot.lane.b32.xlu1 %v1607_v26, %s2171_s23  ;;  %1632 = vrot.lane.b32.xlu0 %v1631_v46, %s2172_s29 }
 0x1d2   : > { %v1639_v18 = vcombine.low %v1464_v9, %v1473_v27  ;;  %v1887_v34 = vcombine.high %v1464_v9, %v1473_v27 }
 0x1d3   : > { %v1640_v33 = vcombine.low %v1482_v28, %v1491_v29  ;;  %v1888_v3 = vcombine.high %v1482_v28, %v1491_v29 }
 0x1d4   : > { %v1647_v4 = vrot.slane %v1639_v18, %v2410_v39  ;;  %v1671_v35 = vrot.slane %v1887_v34, %v2410_v39 }
 0x1d5   : > { %v1654_v19 = vrot.slane %v1640_v33, %v2410_v39  ;;  %v1678_v36 = vrot.slane %v1888_v3, %v2410_v39 }
 0x1d7   : > { %v1655_v37 = vcombine.low %v1647_v4, %v1654_v19  ;;  %v1679_v40 = vcombine.low %v1671_v35, %v1678_v36 }
 0x1d9   : > { %1656 = vrot.lane.b32.xlu1 %v1655_v37, %s2173_s30  ;;  %1680 = vrot.lane.b32.xlu0 %v1679_v40, %s2174_s4 }
 0x238   : > { %v1537_v38 = vpop.permute.xlu0 %1536 }
 0x239   : > { %v1684_v45 = vsel %vm1683_vm15, %v1513_v30, %v1537_v38 }
 0x23b   : > { %v1585_v44 = vpop.permute.xlu1 %1584 }
 0x23c   : > { %v1561_v14 = vpop.permute.xlu0 %1560 }
 0x23d   : > { %v1686_v41 = vsel %vm1685_vm0, %v1684_v45, %v1561_v14 }
 0x23e   : > { %v1688_v42 = vsel %vm1687_vm1, %v1686_v41, %v1585_v44 }
 0x243   : > { %v1609_v47 = vpop.permute.xlu1 %1608  ;;  %v1633_v48 = vpop.permute.xlu0 %1632 }
 0x244   : > { %v1690_v39 = vsel %vm1689_vm2, %v1688_v42, %v1609_v47 }
 0x245   : > { %v1692_v7 = vsel %vm1691_vm3, %v1690_v39, %v1633_v48 }
 0x24b   : > { %v1657_v49 = vpop.permute.xlu1 %1656  ;;  %v1681_v50 = vpop.permute.xlu0 %1680 }
 0x24c   : > { %v1694_v51 = vsel %vm1693_vm4, %v1692_v7, %v1657_v49 }
 0x24d   : > { %v1696_v32 = vsel %vm1695_vm5, %v1694_v51, %v1681_v50 }
 0x24e   : > { %v1697_v55 = vpack.c.bf16 %v1696_v32, %v1696_v32 }
 0x250   : > { %1699 = vst.msk [vmem:[%s224_s25] sm:$0xf] %vm1698_vm6, %v1697_v55 }
 0x251 PF: > { %s1890_s5 = sshll.u32 %s2134_s17, 2  ;;  %s1716_s26 = sshll.u32 %s224_s25, 4  ;;  %s2525_s26 = int_to_ptr.vmem [resolvable:$true] %s1716_s26 }
 0x252   : > { %s1712_s8 = sadd.s32 %s2130_s16, %s1890_s5  ;;  %s2600_s22 = sand.u32 1, %s2118_s13  }
 0x253   : > { %s1891_s7 = sshll.u32 %s1712_s8, 6  ;;  %s1701_s23 = scalar_lea.sflag [#allocation5], %s2600_s22 }
 0x254   : > { %s1714_s11 = scalar_lea.hbm %s2585_s3, %s1891_s7  ;;  %s2040_s29 = scalar_lea.vmem %s2525_s26, 64 }
 0x255   : > { %p2041_p10 = scmp.ne.s32.totalorder %s2525_s26, %s2040_s29  ;;  %s2175_s16 = smov [#allocation4]  }
 0x256   : > { %s2044_s17 = sshll.u32 %s2175_s16, 4  ;;  %s2045_s17 = int_to_ptr.vmem [resolvable:$false] %s2044_s17 }
 0x257   : > { %p2042_p11 = pnand %p2041_p10, %p2258_p6  ;;  %s2046_s25 = scalar_lea.vmem %s2045_s17, 128 }
 0x258   : > { %p2047_p13 = scmp.lt.s32.totalorder %s2525_s26, %s2045_s17  ;;  %p2048_p0 = scmp.lt.s32.totalorder %s2046_s25, %s2040_s29 }
 0x259   : > { %p2043_p12 = pneg %p2042_p11 }
 0x25a   : > { %p2049_p1 = por %p2048_p0, %p2047_p13 }
 0x25c   : > { %p2050_p2 = pnand %p2049_p1, %p2043_p12 }
 0x25e   : > { %2053 = shalt.err (!%p2050_p2)
}
 0x25f   : > { %s2054_s9 = scalar_lea.hbm %s1714_s11, 64  ;;  %s2058_s5 = scalar_lea.hbm %s2585_s3, 512 }
 0x260   : > { %p2055_p3 = scmp.ne.s32.totalorder %s1714_s11, %s2054_s9  ;;  %p2059_p8 = scmp.lt.u32.totalorder %s1714_s11, %s2585_s3 }
 0x261   : > { %p2060_p9 = scmp.lt.u32.totalorder %s2058_s5, %s2054_s9  ;;  %p2062_p11 = scmp.lt.u32.totalorder %s2054_s9, %s1714_s11 }
 0x262   : > { %p2056_p4 = pnand %p2055_p3, %p2258_p6 }
 0x263   : > { %p2061_p10 = por %p2060_p9, %p2059_p8 }
 0x264   : > { %p2057_p5 = pneg %p2056_p4 }
 0x265   : > { %p2063_p13 = por %p2062_p11, %p2061_p10 }
 0x267   : > { %p2064_p12 = pnand %p2063_p13, %p2057_p5 }
 0x269   : > { %2067 = shalt.err (!%p2064_p12)
}
 0x26a   : > { %1915 = dma.vmem_to_hbm [thread:$0]  (%p2258_p6), %s2525_s26, 64, %s1714_s11, %s1701_s23  }
 0x26b PF: > { %p1921_p0 = scmp.ge.s32.totalorder %s2150_s21, 2  ;;  %s1728_s10 = sand.u32 1, %s2114_s12  }
 0x26c   : > { %s1729_s15 = scalar_lea.sflag [#allocation5], %s1728_s10 }
 0x26d   : > { %p1918_p1 = pnand %p1921_p0, %p2265_p7 }
 0x26f   : > { %2109 = dma.done.wait (!%p1918_p1), %s1729_s15, 64  }
 0x270   : > { %2111 = vsyncadd (!%p1918_p1), %s1729_s15, 4294967232  ;;  %s16_s21 = sadd.s32 1, %s2150_s21   ;;  %s2601_s27 = sld [smem:[#allocation7_spill]] }
 0x271   : > { %p13_p2 = scmp.ge.s32.totalorder %s16_s21, 42   ;;  %s2602_s26 = sld [smem:[#allocation8_spill]] }
 0x272   : > { %s2603_s12 = smov %s2118_s13  ;;  %s2604_s13 = smov %s2122_s14 }
 0x273   : > { %s2605_s14 = smov %s2279_s6  ;;  %s2606_s15 = smov %s2138_s18 }
 0x274   : > { %s2607_s16 = smov %s2142_s19  ;;  %s2608_s17 = smov %s2146_s20 }
 0x275   : > { %s2609_s18 = smov %s2613_s24  ;;  %15 = sbr.rel (!%p13_p2) target bundleno = 6 (0x6), region = 82 }
 0x276   : > { %s2610_s19 = smov %s2601_s27 }
 0x277   : > { %s2611_s20 = smov %s2602_s26 }
 0x27c   :  { %1734 = vsyncpa [#allocation5], 1 }
 0x27d   :  { %1736 = vsyncpa [#allocation5 + $0x1], 1 }

</bundles_post_ra>
